<compile_context>
chip_gen: v5e
topology: v5e:2x2
jax: 0.10.0
libtpu: 0.0.40
codegen_flags: <defaults>
</compile_context>

<pallas_src>
import jax
import jax.numpy as jnp
from jax.experimental import pallas as pl
from jax.experimental.pallas import tpu as pltpu


def _nearest_upsample_kernel(x_ref, rw_ref, o_ref):
    # x_ref : (1, Cb, Ht, W)        input slab (channel/row tile of one image)
    # rw_ref: (W, s*s*W)            0/1 replication matrix (grid-invariant)
    # o_ref : (1, Cb, Ht, s*s*W)    lane-dense output slab
    x = x_ref[0]  # (Cb, Ht, W), kept in the input dtype
    # One matmul handles both width replication and the s contiguous row
    # copies.  Each output element accumulates exactly one non-zero product,
    # so f32 accumulation + cast back is bit-exact for float inputs.
    o_ref[0] = jnp.einsum(
        "chw,wv->chv",
        x,
        rw_ref[...],
        preferred_element_type=jnp.float32,
    ).astype(o_ref.dtype)


def _pick_tiles(C, H, W, s, itemsize):
    """Pick channel/row tile sizes keeping double-buffered blocks VMEM-friendly."""
    budget = 8 * 1024 * 1024  # fits the default scoped VMEM on v5e/v6e/v7x
    ow_full = s * s * W

    def block_bytes(cb, ht):
        in_b = cb * ht * W * itemsize
        out_b = cb * ht * ow_full * itemsize
        tmp_b = cb * ht * ow_full * 4  # f32 matmul result inside the kernel
        return 2 * (in_b + out_b) + tmp_b  # in/out blocks are double-buffered

    # Row tile: full H when it fits (or when H is not 8-aligned, to satisfy the
    # (8, 128) block-shape rule via the full-dim escape); otherwise the largest
    # multiple-of-8 divisor that fits.
    if H % 8 != 0 or block_bytes(1, H) <= budget:
        ht = H
    else:
        ht = 8
        for d in range(8, H + 1, 8):
            if H % d == 0 and block_bytes(1, d) <= budget:
                ht = d

    # Channel tile: largest divisor of C that still fits.
    cb = 1
    for d in range(1, C + 1):
        if C % d == 0 and block_bytes(d, ht) <= budget:
            cb = d
    return cb, ht


def interpolate_nearest(x, scale_factor):
    """Nearest-neighbor upsampling of an NCHW float tensor by an integer factor."""
    # TODO(synk): non-integer scale_factor (allowed by PyTorch F.interpolate)
    # and integer input dtypes are not implemented in this kernel.
    s = int(scale_factor)
    assert s == scale_factor and s >= 1, "only integer scale_factor supported"
    assert jnp.issubdtype(x.dtype, jnp.floating), "only float dtypes supported"
    if s == 1:
        return x

    N, C, H, W = x.shape
    OH, OW = H * s, W * s

    # 0/1 replication matrix R[w, j] = 1 iff (j % OW) // s == w, built once in
    # the input dtype (0/1 are exact in bf16/f16/f32).  One matmul with R does
    # width replication AND lays out the s row-replicas contiguously.
    j = jnp.arange(s * OW)
    rw = (((j % OW) // s)[None, :] == jnp.arange(W)[:, None]).astype(x.dtype)

    cb, ht = _pick_tiles(C, H, W, s, jnp.dtype(x.dtype).itemsize)
    grid = (N, C // cb, H // ht)

    out = pl.pallas_call(
        _nearest_upsample_kernel,
        out_shape=jax.ShapeDtypeStruct((N, C, H, s * OW), x.dtype),
        grid_spec=pltpu.PrefetchScalarGridSpec(
            num_scalar_prefetch=0,
            grid=grid,
            in_specs=[
                pl.BlockSpec((1, cb, ht, W), lambda n, c, h: (n, c, h, 0)),
                # Grid-invariant block index: fetched once, stays resident.
                pl.BlockSpec((W, s * OW), lambda n, c, h: (0, 0)),
            ],
            out_specs=pl.BlockSpec(
                (1, cb, ht, s * OW), lambda n, c, h: (n, c, h, 0)
            ),
        ),
        compiler_params=pltpu.CompilerParams(
            dimension_semantics=("parallel", "parallel", "parallel"),
        ),
    )(x, rw)

    # Free contiguous reshape: (N, C, H, s*OW) -> (N, C, H*s, OW).
    return out.reshape(N, C, OH, OW)


class Interpolate:
    """JAX/Pallas counterpart of the PyTorch Interpolate module (no parameters)."""

    def __init__(self, scale_factor):
        self.scale_factor = scale_factor

    def __call__(self, x):
        return interpolate_nearest(x, self.scale_factor)


if __name__ == "__main__":
    key = jax.random.PRNGKey(0)
    scale_factor = 2
    module = Interpolate(scale_factor)

    # --- main case: N=2, C=4, H=W=16 (8-aligned rows) ---
    N, C, H, W = 2, 4, 16, 16
    x = jax.random.normal(key, (N, C, H, W), dtype=jnp.float32)

    out = jax.block_until_ready(module(x))
    ref = jnp.repeat(jnp.repeat(x, scale_factor, axis=2), scale_factor, axis=3)
    assert out.shape == (N, C, H * scale_factor, W * scale_factor), out.shape
    assert out.dtype == x.dtype, out.dtype
    assert jnp.array_equal(out, ref), "f32 mismatch vs reference nearest upsample"

    # bfloat16 path (compute stays in bf16; replication is bit-exact)
    x_bf = x.astype(jnp.bfloat16)
    out_bf = jax.block_until_ready(module(x_bf))
    ref_bf = jnp.repeat(jnp.repeat(x_bf, scale_factor, axis=2), scale_factor, axis=3)
    assert out_bf.dtype == jnp.bfloat16, out_bf.dtype
    assert jnp.array_equal(out_bf, ref_bf), "bf16 mismatch vs reference"

    # --- non-8-aligned spatial dims (typical ROI-head 7x7 feature map) ---
    x7 = jax.random.normal(jax.random.PRNGKey(1), (2, 4, 7, 7), dtype=jnp.float32)
    out7 = jax.block_until_ready(module(x7))
    ref7 = jnp.repeat(jnp.repeat(x7, scale_factor, axis=2), scale_factor, axis=3)
    assert out7.shape == (2, 4, 14, 14), out7.shape
    assert jnp.array_equal(out7, ref7), "7x7 mismatch vs reference"

    print("KERNEL_OK")
</pallas_src>

<mosaic_0001>
module attributes {stable_mosaic.version = 11 : i64} {
  func.func @_nearest_upsample_kernel(%arg0: i32, %arg1: i32, %arg2: i32, %arg3: memref<1x4x16x16xf32, #tpu.memory_space<vmem>>, %arg4: memref<16x64xf32, #tpu.memory_space<vmem>>, %arg5: memref<1x4x16x64xf32, #tpu.memory_space<vmem>>) attributes {dimension_semantics = [#tpu.dimension_semantics<parallel>, #tpu.dimension_semantics<parallel>, #tpu.dimension_semantics<parallel>], iteration_bounds = array<i64: 2, 1, 1>, scalar_prefetch = 0 : i64, scratch_operands = 0 : i64, tpu.core_type = #tpu.core_type<tc>, window_params = [{transform_indices = @transform_0, window_bounds = array<i64: 1, 4, 16, 16>}, {pipeline_mode = #tpu.pipeline_mode<synchronous>, transform_indices = @transform_1, window_bounds = array<i64: 16, 64>}, {transform_indices = @transform_2, window_bounds = array<i64: 1, 4, 16, 64>}]} {
    %c0 = arith.constant 0 : index
    %c0_0 = arith.constant 0 : index
    %c0_1 = arith.constant 0 : index
    %c0_2 = arith.constant 0 : index
    %0 = vector.load %arg3[%c0, %c0_0, %c0_1, %c0_2] : memref<1x4x16x16xf32, #tpu.memory_space<vmem>>, vector<1x4x16x16xf32>
    %1 = vector.shape_cast %0 : vector<1x4x16x16xf32> to vector<4x16x16xf32>
    %c0_3 = arith.constant 0 : index
    %c0_4 = arith.constant 0 : index
    %2 = vector.load %arg4[%c0_3, %c0_4] : memref<16x64xf32, #tpu.memory_space<vmem>>, vector<16x64xf32>
    "tpu.trace_start"() <{level = 10 : i32, message = "chw,wv->chv"}> : () -> ()
    %cst = arith.constant dense<0.000000e+00> : vector<4x16x64xf32>
    %3 = tpu.matmul %1, %2, %cst {dimension_numbers = #tpu.dot_dimension_numbers<[2], [0], [0, 1], [1], [0, 0, 0, 1, 1, 1], [], []>} : vector<4x16x16xf32>, vector<16x64xf32>, vector<4x16x64xf32> -> vector<4x16x64xf32>
    "tpu.trace_stop"() : () -> ()
    %c0_5 = arith.constant 0 : index
    %c0_6 = arith.constant 0 : index
    %c0_7 = arith.constant 0 : index
    %c0_8 = arith.constant 0 : index
    %4 = vector.load %arg5[%c0_5, %c0_6, %c0_7, %c0_8] : memref<1x4x16x64xf32, #tpu.memory_space<vmem>>, vector<1x4x16x64xf32>
    %5 = vector.shape_cast %4 : vector<1x4x16x64xf32> to vector<4x16x64xf32>
    %6 = vector.shape_cast %3 : vector<4x16x64xf32> to vector<1x4x16x64xf32>
    tpu.vector_store %arg5[%c0_5, %c0_6, %c0_7, %c0_8], %6 {strides = array<i32>} : memref<1x4x16x64xf32, #tpu.memory_space<vmem>>, vector<1x4x16x64xf32>,
    return
  }
  func.func @transform_0(%arg0: i32, %arg1: i32, %arg2: i32) -> (i32, i32, i32, i32) {
    %c0_i32 = arith.constant 0 : i32
    %c0_i32_0 = arith.constant 0 : i32
    return %arg0, %arg1, %arg2, %c0_i32 : i32, i32, i32, i32
  }
  func.func @transform_1(%arg0: i32, %arg1: i32, %arg2: i32) -> (i32, i32) {
    %c0_i32 = arith.constant 0 : i32
    %c0_i32_0 = arith.constant 0 : i32
    %c0_i32_1 = arith.constant 0 : i32
    return %c0_i32, %c0_i32_0 : i32, i32
  }
  func.func @transform_2(%arg0: i32, %arg1: i32, %arg2: i32) -> (i32, i32, i32, i32) {
    %c0_i32 = arith.constant 0 : i32
    %c0_i32_0 = arith.constant 0 : i32
    return %arg0, %arg1, %arg2, %c0_i32 : i32, i32, i32, i32
  }
}

</mosaic_0001>

<bundles_post_ra>
// kernel: tpu_custom_call.1
= control target key start
LH: loop header
LB: loop body
LE: loop exit
PB: predicated region body
PF: predicated region fallthrough
CT: control target
= control target key end

     0   :  { %7 = vsyncpa [#allocation3], 0  ;;  %s880_s0 = inlined_call_operand.hbm [shape: f32[2,4,16,16], index: 0, kind: input, shape index: {}]   ;;  %s881_s1 = inlined_call_operand.hbm [shape: f32[16,64], index: 1, kind: input, shape index: {}]   ;;  %s882_s2 = inlined_call_operand.hbm [shape: f32[2,4,16,64], index: 2, kind: output, shape index: {}]  }
   0x1   :  { %9 = vsyncpa [#allocation3 + $0x1], 0 }
   0x2   :  { %10 = vsyncpa [#allocation6], 0 }
   0x3   :  { %11 = vsyncpa [#allocation4], 0 }
   0x4   :  { %13 = vsyncpa [#allocation4 + $0x1], 0  ;;  %s705_s9 = smov 0   ;;  %s707_s10 = smov 0  }
   0x5   :  { %s709_s11 = smov 0   ;;  %s711_s12 = smov 0  }
   0x6   :  { %s713_s13 = smov 0   ;;  %s715_s14 = smov 0  }
   0x7 LB: > { %s427_s15 = sadd.s32 4294967295, %s683_s14   ;;  %s428_s16 = sadd.s32 4294967294, %s683_s14   ;;  %s683_s14 = sphi %s715_s14, %s19_s14   ;;  %s679_s13 = sphi %s713_s13, %s894_s13   ;;  %s675_s12 = sphi %s711_s12, %s893_s12   ;;  %s671_s11 = sphi %s709_s11, %s892_s11   ;;  %s667_s10 = sphi %s707_s10, %s891_s10   ;;  %s663_s9 = sphi %s705_s9, %s890_s9  }
   0x8   : > { %p62_p0 = scmp.ne.s32.totalorder %s667_s10, %s663_s9  ;;  %p739_p1 = scmp.eq.s32.totalorder %s427_s15, 0 }
   0x9   : > { %p743_p2 = scmp.eq.s32.totalorder %s427_s15, 1  ;;  %p117_p3 = scmp.eq.s32.totalorder %s428_s16, 1 }
   0xa   : > { %p749_p4 = por %p739_p1, %p62_p0  ;;  %p429_p5 = scmp.ge.s32.totalorder %s683_s14, 1 }
   0xb   : > { %p754_p6 = por %p117_p3, %p62_p0  ;;  %p124_p7 = scmp.lt.s32.totalorder %s683_s14, 3 }
   0xc   : > { %s135_s23 = sshll.u32 %s881_s1, 4  ;;  %s685_s25 = smov [#allocation5]   ;;  %s136_s23 = int_to_ptr.hbm [resolvable:$true] %s135_s23 }
   0xd   : > { %p762_p8 = pnand %p429_p5, %p124_p7  ;;  %s137_s26 = sshll.u32 %s685_s25, 4  ;;  %s138_s26 = int_to_ptr.vmem [resolvable:$true] %s137_s26 }
   0xe   : > { %p431_p11 = scmp.ge.s32.totalorder %s683_s14, 2  ;;  %s686_s27 = smov 128  }
   0xf   : > { %p468_p9 = pneg %p762_p8  ;;  %s687_s28 = smov 8  }
  0x10   : > { %s38_s29 = sadd.s32 1, %s679_s13  ;;  %s49_s30 = sadd.s32 1, %s671_s11 }
  0x11   : > { %p469_p10 = pnand %p468_p9, %p739_p1  ;;  %p40_p12 = scmp.ge.s32.totalorder %s38_s29, 2 }
  0x12   : > { %p56_p13 = scmp.ne.s32.totalorder %s671_s11, %s667_s10  ;;  %p57_p0 = scmp.eq.s32.totalorder %s683_s14, 0 }
  0x13   : > { %471 = dma.hbm_to_vmem [thread:$0]  (!%p469_p10), %s136_s23, 256, %s138_s26, [#allocation6], %s686_s27, %s686_s27, %s687_s28  }
  0x14   : > { %s896_s29 = smov (%p40_p12, %s38_s29), 0  ;;  %p781_p3 = por %p57_p0, %p56_p13 }
  0x15   : > { %p787_p5 = por %p743_p2, %p56_p13  ;;  %s42_s5 = ssub.s32 %s679_s13, %s896_s29 }
  0x16   : > { %p481_p7 = scmp.lt.s32.totalorder %s683_s14, 2  ;;  %p47_p9 = scmp.eq.s32.totalorder %s42_s5, 0 }
  0x17   : > { %s151_s6 = sand.u32 1, %s671_s11   ;;  %s452_s15 = sshll.u32 %s679_s13, 6 }
  0x18   : > { %s432_s7 = sshll.u32 %s151_s6, 6  ;;  %s165_s22 = scalar_lea.hbm %s880_s0, %s452_s15 }
  0x19   : > { %s796_s8 = scalar_select %p47_p9, %s671_s11, %s49_s30  }
  0x1a   : > { %s155_s23 = scalar_lea.vmem [#allocation2], %s432_s7  ;;  %s166_s18 = sshll.u32 %s165_s22, 4  ;;  %s167_s18 = int_to_ptr.hbm [resolvable:$true] %s166_s18 }
  0x1b   : > { %s168_s25 = sshll.u32 %s155_s23, 4  ;;  %p473_p2 = pnand %p481_p7, %p781_p3  ;;  %s169_s25 = int_to_ptr.vmem [resolvable:$true] %s168_s25 }
  0x1c   : > { %s152_s26 = scalar_lea.sflag [#allocation3], %s151_s6  ;;  %180 = sbr.rel (%p762_p8) target bundleno = 185 (0xb9), region = 28 }
  0x1d   : > { %475 = dma.hbm_to_vmem [thread:$0]  (!%p473_p2), %s167_s18, 1024, %s169_s25, %s152_s26, %s686_s27, %s686_s27, %s687_s28  }
  0x1e   : > { %s810_s30 = sand.u32 (!%p762_p8), 1, %s667_s10  }
  0x1f   : > { %s436_s5 = sshll.u32 (!%p762_p8), %s810_s30, 6  ;;  %s183_s7 = scalar_lea.sflag (!%p762_p8), [#allocation3], %s810_s30 }
  0x20   : > { %s186_s3 = scalar_lea.vmem (!%p762_p8), [#allocation2], %s436_s5 }
  0x21   : > { %650 = dma.done.wait (%p749_p4), %s183_s7, 1024  }
  0x22   : > { %652 = vsyncadd (%p749_p4), %s183_s7, 4294966272 }
  0x23   : > { %654 = dma.done.wait (%p739_p1), [#allocation6], 256  }
  0x24   : > { %656 = vsyncadd (%p739_p1), [#allocation6], 4294967040  ;;  %v226_v0 = vld [vmem:[#allocation5 + $0x8] sm:$0xff]  ;;  %v225_v1 = vld [vmem:[#allocation5] sm:$0xff]  ;;  %vm227_vm0 = vcmask 130048   ;;  %vm293_vm1 = vcmask 523264  }
  0x25   : > { %455 = vmatpush.msra.mxu2 %v226_v0  ;;  %456 = vmatpush.msra.mxu3 %v226_v0  ;;  %v221_v2 = vld [vmem:[%s186_s3 + $0x20] sm:$0xff]  ;;  %v223_v3 = vld [vmem:[%s186_s3 + $0x30] sm:$0xff]  ;;  %v222_v6 = vld [vmem:[%s186_s3 + $0x28] sm:$0xff]  ;;  %s212_s17 = scalar_lea.vmem [#allocation7], %s436_s5  ;;  %s453_s19 = sshll.u32 %s675_s12, 6 }
  0x26   : > { %266 = vmatpush.msra.mxu0 %v226_v0  ;;  %454 = vmatpush.msra.mxu1 %v226_v0  ;;  %v217_v4 = vld [vmem:[%s186_s3] sm:$0xff]  ;;  %v219_v5 = vld [vmem:[%s186_s3 + $0x10] sm:$0xff]  ;;  %v224_v7 = vld [vmem:[%s186_s3 + $0x38] sm:$0xff]  ;;  %s319_s28 = scalar_lea.hbm %s882_s2, %s453_s19  ;;  %s320_s6 = sshll.u32 %s212_s17, 4  ;;  %s321_s6 = int_to_ptr.vmem [resolvable:$true] %s320_s6 }
  0x27   : > { %458 = vmatpush.msra.mxu2 %v225_v1  ;;  %459 = vmatpush.msra.mxu3 %v225_v1  ;;  %v218_v8 = vld [vmem:[%s186_s3 + $0x8] sm:$0xff]  ;;  %v220_v9 = vld [vmem:[%s186_s3 + $0x18] sm:$0xff]  ;;  %s322_s15 = sshll.u32 %s319_s28, 4  ;;  %s303_s12 = scalar_lea.sflag [#allocation4], %s810_s30  ;;  %s323_s15 = int_to_ptr.hbm [resolvable:$true] %s322_s15 }
  0x28   : > { %443 = vmatmul.msk.f32.vlgmr.msra.gmra.mxu2 %vm227_vm0, %v221_v2  ;;  %445 = vmatmul.msk.f32.vlgmr.msra.gmra.mxu3 %vm227_vm0, %v223_v3  ;;  %s611_s16 = sshra.s32 %s323_s15, 4  ;;  %s617_s25 = scalar_lea.hbm %s882_s2, 128  ;;  %s612_s16 = int_to_ptr.hbm [resolvable:$true] %s611_s16 }
  0x29   : > { %267 = vmatpush.msra.mxu0 %v225_v1  ;;  %457 = vmatpush.msra.mxu1 %v225_v1  ;;  %s613_s21 = scalar_lea.hbm %s612_s16, 64  ;;  %p618_p10 = scmp.lt.s32.totalorder %s612_s16, %s882_s2 }
  0x2a   : > { %439 = vmatmul.msk.f32.vlgmr.msra.gmra.mxu0 %vm227_vm0, %v217_v4  ;;  %441 = vmatmul.msk.f32.vlgmr.msra.gmra.mxu1 %vm227_vm0, %v219_v5  ;;  %p614_p1 = scmp.ne.s32.totalorder %s612_s16, %s613_s21  ;;  %p619_p12 = scmp.lt.s32.totalorder %s617_s25, %s613_s21 }
  0x2c   : > { %p615_p4 = pnand %p614_p1, %p787_p5  ;;  %p620_p13 = por %p619_p12, %p618_p10 }
  0x2e   : > { %p616_p8 = pneg %p615_p4 }
  0x30   : > { %444 = vmatmul.msk.f32.gmra.mxu2 %vm227_vm0, %v222_v6  ;;  %446 = vmatmul.msk.f32.gmra.mxu3 %vm227_vm0, %v224_v7  ;;  %p621_p0 = pnand %p620_p13, %p616_p8 }
  0x32   : > { %440 = vmatmul.msk.f32.gmra.mxu0 %vm227_vm0, %v218_v8  ;;  %442 = vmatmul.msk.f32.gmra.mxu1 %vm227_vm0, %v220_v9 }
  0xa7   : > { %v269_v10 = vpop.f32.mrf.mxu0  ;;  %v275_v11 = vpop.f32.mrf.mxu1 }
  0xa8   : > { %294 = vst.msk [vmem:[%s212_s17] sm:$0xff] %vm293_vm1, %v269_v10 }
  0xa9   : > { %296 = vst.msk [vmem:[%s212_s17 + $0x10] sm:$0xff] %vm293_vm1, %v275_v11 }
  0xab   : > { %v281_v12 = vpop.f32.mrf.mxu2  ;;  %v287_v13 = vpop.f32.mrf.mxu3 }
  0xac   : > { %298 = vst.msk [vmem:[%s212_s17 + $0x20] sm:$0xff] %vm293_vm1, %v281_v12 }
  0xad   : > { %300 = vst.msk [vmem:[%s212_s17 + $0x30] sm:$0xff] %vm293_vm1, %v287_v13 }
  0xaf   : > { %v272_v14 = vpop.f32.mrf.mxu0  ;;  %v278_v15 = vpop.f32.mrf.mxu1 }
  0xb0   : > { %295 = vst.msk [vmem:[%s212_s17 + $0x8] sm:$0xff] %vm293_vm1, %v272_v14 }
  0xb1   : > { %297 = vst.msk [vmem:[%s212_s17 + $0x18] sm:$0xff] %vm293_vm1, %v278_v15 }
  0xb3   : > { %v284_v16 = vpop.f32.mrf.mxu2  ;;  %v290_v17 = vpop.f32.mrf.mxu3 }
  0xb4   : > { %299 = vst.msk [vmem:[%s212_s17 + $0x28] sm:$0xff] %vm293_vm1, %v284_v16 }
  0xb5   : > { %301 = vst.msk [vmem:[%s212_s17 + $0x38] sm:$0xff] %vm293_vm1, %v290_v17 }
  0xb6   : > { %624 = shalt.err (!%p621_p0)
}
  0xb7   : > { %s688_s30 = smov 128   ;;  %s689_s5 = smov 8  }
  0xb8   : > { %466 = dma.vmem_to_hbm [thread:$0]  (%p787_p5), %s321_s6, 1024, %s323_s15, %s303_s12, %s688_s30, %s688_s30, %s689_s5  }
  0xb9 PF: > { %s337_s7 = sand.u32 1, %s663_s9   ;;  %p477_p3 = pnand %p431_p11, %p754_p6 }
  0xba   : > { %s338_s3 = scalar_lea.sflag [#allocation4], %s337_s7 }
  0xbb   : > { %p478_p7 = pneg %p477_p3 }
  0xbd   : > { %658 = dma.done.wait (%p478_p7), %s338_s3, 1024  }
  0xbe   : > { %660 = vsyncadd (%p478_p7), %s338_s3, 4294966272  ;;  %s19_s14 = sadd.s32 1, %s683_s14   ;;  %s890_s9 = smov %s667_s10 }
  0xbf   : > { %p16_p9 = scmp.ge.s32.totalorder %s19_s14, 4   ;;  %s891_s10 = smov %s671_s11 }
  0xc0   : > { %s892_s11 = smov %s796_s8  ;;  %s893_s12 = smov %s679_s13 }
  0xc1   : > { %s894_s13 = smov %s896_s29  ;;  %18 = sbr.rel (!%p16_p9) target bundleno = 7 (0x7), region = 77 }
  0xc6   :  { %344 = vsyncpa [#allocation3], 1 }
  0xc7   :  { %346 = vsyncpa [#allocation3 + $0x1], 1 }
  0xc8   :  { %347 = vsyncpa [#allocation6], 1 }
  0xc9   :  { %348 = vsyncpa [#allocation4], 1 }
  0xca   :  { %350 = vsyncpa [#allocation4 + $0x1], 1 }

</bundles_post_ra>
